<compile_context>
chip_gen: v5e
topology: v5e:2x2
jax: 0.10.0
libtpu: 0.0.40
codegen_flags: <defaults>
</compile_context>

<pallas_src>
import jax
import jax.numpy as jnp
from jax.experimental import pallas as pl
from jax.experimental.pallas import tpu as pltpu

HIDDEN_SIZE = 100           # matches the PyTorch module
LANE = 128                  # TPU lane width (last-dim tiling)
SUBLANE = 8                 # TPU sublane width (second-to-last dim tiling)
DEFAULT_BATCH_TILE = 128    # rows per grid step once batch gets large


def _round_up(n, m):
    return ((n + m - 1) // m) * m


def _pad2d(a, rows, cols):
    return jnp.pad(a, ((0, rows - a.shape[0]), (0, cols - a.shape[1])))


def mlp_kernel(x_ref, w1_ref, b1_ref, w2_ref, b2_ref, w3_ref, b3_ref, o_ref):
    # Fused F.normalize: per-row L2 normalization, kept in f32 (VPU reduce +
    # rsqrt-ish scalar path, hidden under the first matmul).  Zero-padded rows
    # / columns stay exactly zero, so padding never pollutes real outputs.
    x = x_ref[...]                                     # (b_tile, IN_P) f32
    ss = jnp.sum(x * x, axis=-1, keepdims=True)
    xn = x * (1.0 / jnp.maximum(jnp.sqrt(ss), 1e-12))  # matches F.normalize eps

    mxu_dtype = w1_ref.dtype                           # bf16 (or f32)

    # Layer 1: Linear + ReLU  (bf16 MXU operands, f32 accumulate + f32 epilogue)
    h1 = jnp.dot(xn.astype(mxu_dtype), w1_ref[...],
                 preferred_element_type=jnp.float32)
    h1 = jnp.maximum(h1 + b1_ref[...], 0.0)

    # Layer 2: Linear + ReLU
    h2 = jnp.dot(h1.astype(mxu_dtype), w2_ref[...],
                 preferred_element_type=jnp.float32)
    h2 = jnp.maximum(h2 + b2_ref[...], 0.0)

    # Layer 3: Linear (logits, no activation)
    y = jnp.dot(h2.astype(mxu_dtype), w3_ref[...],
                preferred_element_type=jnp.float32)
    o_ref[...] = (y + b3_ref[...]).astype(o_ref.dtype)


def pad_params(params, mxu_dtype=jnp.bfloat16):
    """Zero-pad feature dims to lane multiples; weights -> mxu_dtype, biases f32.

    Done once, off the per-call path.
    """
    w1, b1 = params["w1"], params["b1"]
    w2, b2 = params["w2"], params["b2"]
    w3, b3 = params["w3"], params["b3"]
    in_f, hid = w1.shape
    out_f = w3.shape[1]
    in_p = _round_up(in_f, LANE)
    h_p = _round_up(hid, LANE)
    out_p = _round_up(out_f, LANE)

    padded = dict(
        w1=_pad2d(w1, in_p, h_p).astype(mxu_dtype),
        b1=_pad2d(b1, 1, h_p).astype(jnp.float32),
        w2=_pad2d(w2, h_p, h_p).astype(mxu_dtype),
        b2=_pad2d(b2, 1, h_p).astype(jnp.float32),
        w3=_pad2d(w3, h_p, out_p).astype(mxu_dtype),
        b3=_pad2d(b3, 1, out_p).astype(jnp.float32),
    )
    dims = dict(in_features=in_f, hidden=hid, out_features=out_f,
                in_p=in_p, h_p=h_p, out_p=out_p)
    return padded, dims


def nn_regressor_forward(x, padded_params, dims, *, batch_tile=DEFAULT_BATCH_TILE):
    """Fused normalize + 3-layer MLP.

    x: (B, in_features) float32 raw features (normalization is fused in-kernel,
       matching the module's F.normalize preprocessing).
    Returns (B, out_features) float32 logits.
    """
    B, in_f = x.shape
    assert in_f == dims["in_features"]
    in_p, h_p, out_p = dims["in_p"], dims["h_p"], dims["out_p"]
    out_f = dims["out_features"]

    # Batch tiling: pad to sublane multiple; tile 128 rows per grid step once
    # the batch is large (weights stay VMEM-resident across iterations).
    b_tile = min(batch_tile, _round_up(B, SUBLANE))
    b_pad = _round_up(B, b_tile)
    grid = (b_pad // b_tile,)

    x_p = _pad2d(x.astype(jnp.float32), b_pad, in_p)

    p = padded_params
    w_bytes = sum(int(v.size) * v.dtype.itemsize for v in p.values())
    cost = pl.CostEstimate(
        flops=2 * b_pad * (in_p * h_p + h_p * h_p + h_p * out_p),
        transcendentals=b_pad,  # one rsqrt/sqrt per row
        bytes_accessed=int(x_p.size) * 4 + w_bytes + b_pad * out_p * 4,
    )

    fixed = lambda i: (0, 0)  # weights/biases: same block every iteration
    out = pl.pallas_call(
        mlp_kernel,
        out_shape=jax.ShapeDtypeStruct((b_pad, out_p), jnp.float32),
        grid=grid,
        in_specs=[
            pl.BlockSpec((b_tile, in_p), lambda i: (i, 0)),   # x: tiled on batch
            pl.BlockSpec((in_p, h_p), fixed),                 # w1
            pl.BlockSpec((1, h_p), fixed),                    # b1
            pl.BlockSpec((h_p, h_p), fixed),                  # w2
            pl.BlockSpec((1, h_p), fixed),                    # b2
            pl.BlockSpec((h_p, out_p), fixed),                # w3
            pl.BlockSpec((1, out_p), fixed),                  # b3
        ],
        out_specs=pl.BlockSpec((b_tile, out_p), lambda i: (i, 0)),
        compiler_params=pltpu.CompilerParams(
            dimension_semantics=("parallel",)),               # megacore on v7x
        cost_estimate=cost,
    )(x_p, p["w1"], p["b1"], p["w2"], p["b2"], p["w3"], p["b3"])

    return out[:B, :out_f]


def init_params(key, in_features, hidden, out_features):
    """Deterministic init mimicking nn.Linear's uniform(-1/sqrt(fan_in), 1/sqrt(fan_in))."""
    ks = jax.random.split(key, 6)

    def lin(kw, kb, fan_in, fan_out):
        bound = 1.0 / jnp.sqrt(jnp.float32(fan_in))
        w = jax.random.uniform(kw, (fan_in, fan_out), jnp.float32, -bound, bound)
        b = jax.random.uniform(kb, (1, fan_out), jnp.float32, -bound, bound)
        return w, b

    w1, b1 = lin(ks[0], ks[1], in_features, hidden)
    w2, b2 = lin(ks[2], ks[3], hidden, hidden)
    w3, b3 = lin(ks[4], ks[5], hidden, out_features)
    return dict(w1=w1, b1=b1, w2=w2, b2=b2, w3=w3, b3=b3)


def reference_forward(x_raw, p, use_bf16=False):
    """Pure-JAX reference: F.normalize + MLP (optionally with bf16 MXU operands)."""
    norm = jnp.sqrt(jnp.sum(x_raw * x_raw, axis=1, keepdims=True))
    x = x_raw * (1.0 / jnp.maximum(norm, 1e-12))
    c = (lambda a: a.astype(jnp.bfloat16)) if use_bf16 else (lambda a: a)
    h1 = jnp.maximum(
        jnp.dot(c(x), c(p["w1"]), preferred_element_type=jnp.float32) + p["b1"], 0.0)
    h2 = jnp.maximum(
        jnp.dot(c(h1), c(p["w2"]), preferred_element_type=jnp.float32) + p["b2"], 0.0)
    return jnp.dot(c(h2), c(p["w3"]), preferred_element_type=jnp.float32) + p["b3"]


if __name__ == "__main__":
    # Shapes consistent with the module's forward:
    # batch = BATCH_SIZE (10), in_features = 32, hidden = 100, out_features = 8.
    B, IN, H, OUT = 10, 32, HIDDEN_SIZE, 8

    key = jax.random.PRNGKey(0)
    kx, kp = jax.random.split(key)

    x_raw = jax.random.normal(kx, (B, IN), jnp.float32)
    params = init_params(kp, IN, H, OUT)

    # One-time param padding / bf16 cast (off the per-call path).
    padded, dims = pad_params(params, mxu_dtype=jnp.bfloat16)

    logits = nn_regressor_forward(x_raw, padded, dims)
    logits = jax.block_until_ready(logits)
    assert logits.shape == (B, OUT)

    # Matching-precision reference (bf16 operands, f32 accumulation): tight check.
    ref_bf16 = reference_forward(x_raw, params, use_bf16=True)
    assert jnp.allclose(logits, ref_bf16, atol=1e-3, rtol=1e-3), (
        jnp.max(jnp.abs(logits - ref_bf16)))

    # Full-f32 reference (original PyTorch semantics): loose check covering the
    # bf16 operand-cast error.
    ref_f32 = reference_forward(x_raw, params, use_bf16=False)
    assert jnp.allclose(logits, ref_f32, atol=3e-2, rtol=3e-2), (
        jnp.max(jnp.abs(logits - ref_f32)))

    print("KERNEL_OK")
</pallas_src>

<mosaic_0001>
module attributes {stable_mosaic.version = 11 : i64} {
  func.func @mlp_kernel(%arg0: i32, %arg1: memref<16x128xf32, #tpu.memory_space<vmem>>, %arg2: memref<128x128xbf16, #tpu.memory_space<vmem>>, %arg3: memref<1x128xf32, #tpu.memory_space<vmem>>, %arg4: memref<128x128xbf16, #tpu.memory_space<vmem>>, %arg5: memref<1x128xf32, #tpu.memory_space<vmem>>, %arg6: memref<128x128xbf16, #tpu.memory_space<vmem>>, %arg7: memref<1x128xf32, #tpu.memory_space<vmem>>, %arg8: memref<16x128xf32, #tpu.memory_space<vmem>>) attributes {dimension_semantics = [#tpu.dimension_semantics<parallel>], iteration_bounds = array<i64: 1>, scalar_prefetch = 0 : i64, scratch_operands = 0 : i64, tpu.core_type = #tpu.core_type<tc>, window_params = [{transform_indices = @transform_0, window_bounds = array<i64: 16, 128>}, {pipeline_mode = #tpu.pipeline_mode<synchronous>, transform_indices = @transform_1, window_bounds = array<i64: 128, 128>}, {pipeline_mode = #tpu.pipeline_mode<synchronous>, transform_indices = @transform_2, window_bounds = array<i64: 1, 128>}, {pipeline_mode = #tpu.pipeline_mode<synchronous>, transform_indices = @transform_3, window_bounds = array<i64: 128, 128>}, {pipeline_mode = #tpu.pipeline_mode<synchronous>, transform_indices = @transform_4, window_bounds = array<i64: 1, 128>}, {pipeline_mode = #tpu.pipeline_mode<synchronous>, transform_indices = @transform_5, window_bounds = array<i64: 128, 128>}, {pipeline_mode = #tpu.pipeline_mode<synchronous>, transform_indices = @transform_6, window_bounds = array<i64: 1, 128>}, {transform_indices = @transform_7, window_bounds = array<i64: 16, 128>}]} {
    %c0 = arith.constant 0 : index
    %c0_0 = arith.constant 0 : index
    %0 = vector.load %arg1[%c0, %c0_0] : memref<16x128xf32, #tpu.memory_space<vmem>>, vector<16x128xf32>
    %1 = arith.mulf %0, %0 : vector<16x128xf32>
    %cst = arith.constant dense<0.000000e+00> : vector<16xf32>
    %2 = vector.multi_reduction <add>, %1, %cst [1] : vector<16x128xf32> to vector<16xf32>
    %3 = vector.shape_cast %2 : vector<16xf32> to vector<16x1xf32>
    %4 = math.sqrt %3 : vector<16x1xf32>
    %cst_1 = arith.constant 9.99999996E-13 : f32
    %5 = vector.broadcast %cst_1 : f32 to vector<16x1xf32>
    %6 = arith.maximumf %4, %5 : vector<16x1xf32>
    %cst_2 = arith.constant 1.000000e+00 : f32
    %7 = vector.broadcast %cst_2 : f32 to vector<16x1xf32>
    %8 = arith.divf %7, %6 : vector<16x1xf32>
    %9 = vector.broadcast %8 : vector<16x1xf32> to vector<16x128xf32>
    %10 = arith.mulf %0, %9 : vector<16x128xf32>
    %11 = arith.truncf %10 : vector<16x128xf32> to vector<16x128xbf16>
    %c0_3 = arith.constant 0 : index
    %c0_4 = arith.constant 0 : index
    %12 = vector.load %arg2[%c0_3, %c0_4] : memref<128x128xbf16, #tpu.memory_space<vmem>>, vector<128x128xbf16>
    %cst_5 = arith.constant dense<0.000000e+00> : vector<16x128xf32>
    %13 = tpu.matmul %11, %12, %cst_5 {dimension_numbers = #tpu.dot_dimension_numbers<[1], [0], [0], [1], [0, 0, 1, 1], [], []>} : vector<16x128xbf16>, vector<128x128xbf16>, vector<16x128xf32> -> vector<16x128xf32>
    %c0_6 = arith.constant 0 : index
    %c0_7 = arith.constant 0 : index
    %14 = vector.load %arg3[%c0_6, %c0_7] : memref<1x128xf32, #tpu.memory_space<vmem>>, vector<1x128xf32>
    %15 = vector.broadcast %14 : vector<1x128xf32> to vector<16x128xf32>
    %16 = arith.addf %13, %15 : vector<16x128xf32>
    %cst_8 = arith.constant 0.000000e+00 : f32
    %17 = vector.broadcast %cst_8 : f32 to vector<16x128xf32>
    %18 = arith.maximumf %16, %17 : vector<16x128xf32>
    %19 = arith.truncf %18 : vector<16x128xf32> to vector<16x128xbf16>
    %c0_9 = arith.constant 0 : index
    %c0_10 = arith.constant 0 : index
    %20 = vector.load %arg4[%c0_9, %c0_10] : memref<128x128xbf16, #tpu.memory_space<vmem>>, vector<128x128xbf16>
    %cst_11 = arith.constant dense<0.000000e+00> : vector<16x128xf32>
    %21 = tpu.matmul %19, %20, %cst_11 {dimension_numbers = #tpu.dot_dimension_numbers<[1], [0], [0], [1], [0, 0, 1, 1], [], []>} : vector<16x128xbf16>, vector<128x128xbf16>, vector<16x128xf32> -> vector<16x128xf32>
    %c0_12 = arith.constant 0 : index
    %c0_13 = arith.constant 0 : index
    %22 = vector.load %arg5[%c0_12, %c0_13] : memref<1x128xf32, #tpu.memory_space<vmem>>, vector<1x128xf32>
    %23 = vector.broadcast %22 : vector<1x128xf32> to vector<16x128xf32>
    %24 = arith.addf %21, %23 : vector<16x128xf32>
    %cst_14 = arith.constant 0.000000e+00 : f32
    %25 = vector.broadcast %cst_14 : f32 to vector<16x128xf32>
    %26 = arith.maximumf %24, %25 : vector<16x128xf32>
    %27 = arith.truncf %26 : vector<16x128xf32> to vector<16x128xbf16>
    %c0_15 = arith.constant 0 : index
    %c0_16 = arith.constant 0 : index
    %28 = vector.load %arg6[%c0_15, %c0_16] : memref<128x128xbf16, #tpu.memory_space<vmem>>, vector<128x128xbf16>
    %cst_17 = arith.constant dense<0.000000e+00> : vector<16x128xf32>
    %29 = tpu.matmul %27, %28, %cst_17 {dimension_numbers = #tpu.dot_dimension_numbers<[1], [0], [0], [1], [0, 0, 1, 1], [], []>} : vector<16x128xbf16>, vector<128x128xbf16>, vector<16x128xf32> -> vector<16x128xf32>
    %c0_18 = arith.constant 0 : index
    %c0_19 = arith.constant 0 : index
    %30 = vector.load %arg7[%c0_18, %c0_19] : memref<1x128xf32, #tpu.memory_space<vmem>>, vector<1x128xf32>
    %31 = vector.broadcast %30 : vector<1x128xf32> to vector<16x128xf32>
    %32 = arith.addf %29, %31 : vector<16x128xf32>
    %c0_20 = arith.constant 0 : index
    %c0_21 = arith.constant 0 : index
    %33 = vector.load %arg8[%c0_20, %c0_21] : memref<16x128xf32, #tpu.memory_space<vmem>>, vector<16x128xf32>
    tpu.vector_store %arg8[%c0_20, %c0_21], %32 {strides = array<i32>} : memref<16x128xf32, #tpu.memory_space<vmem>>, vector<16x128xf32>,
    return
  }
  func.func @transform_0(%arg0: i32) -> (i32, i32) {
    %c0_i32 = arith.constant 0 : i32
    %c0_i32_0 = arith.constant 0 : i32
    return %arg0, %c0_i32 : i32, i32
  }
  func.func @transform_1(%arg0: i32) -> (i32, i32) {
    %c0_i32 = arith.constant 0 : i32
    %c0_i32_0 = arith.constant 0 : i32
    %c0_i32_1 = arith.constant 0 : i32
    return %c0_i32, %c0_i32_0 : i32, i32
  }
  func.func @transform_2(%arg0: i32) -> (i32, i32) {
    %c0_i32 = arith.constant 0 : i32
    %c0_i32_0 = arith.constant 0 : i32
    %c0_i32_1 = arith.constant 0 : i32
    return %c0_i32, %c0_i32_0 : i32, i32
  }
  func.func @transform_3(%arg0: i32) -> (i32, i32) {
    %c0_i32 = arith.constant 0 : i32
    %c0_i32_0 = arith.constant 0 : i32
    %c0_i32_1 = arith.constant 0 : i32
    return %c0_i32, %c0_i32_0 : i32, i32
  }
  func.func @transform_4(%arg0: i32) -> (i32, i32) {
    %c0_i32 = arith.constant 0 : i32
    %c0_i32_0 = arith.constant 0 : i32
    %c0_i32_1 = arith.constant 0 : i32
    return %c0_i32, %c0_i32_0 : i32, i32
  }
  func.func @transform_5(%arg0: i32) -> (i32, i32) {
    %c0_i32 = arith.constant 0 : i32
    %c0_i32_0 = arith.constant 0 : i32
    %c0_i32_1 = arith.constant 0 : i32
    return %c0_i32, %c0_i32_0 : i32, i32
  }
  func.func @transform_6(%arg0: i32) -> (i32, i32) {
    %c0_i32 = arith.constant 0 : i32
    %c0_i32_0 = arith.constant 0 : i32
    %c0_i32_1 = arith.constant 0 : i32
    return %c0_i32, %c0_i32_0 : i32, i32
  }
  func.func @transform_7(%arg0: i32) -> (i32, i32) {
    %c0_i32 = arith.constant 0 : i32
    %c0_i32_0 = arith.constant 0 : i32
    return %arg0, %c0_i32 : i32, i32
  }
}

</mosaic_0001>

<bundles_post_ra>
// kernel: tpu_custom_call.1
= control target key start
LH: loop header
LB: loop body
LE: loop exit
PB: predicated region body
PF: predicated region fallthrough
CT: control target
= control target key end

     0   :  { %12 = vsyncpa [#allocation3], 0  ;;  %s789_s0 = inlined_call_operand.hbm [shape: f32[16,128], index: 0, kind: input, shape index: {}]   ;;  %s790_s1 = inlined_call_operand.hbm [shape: bf16[128,128], index: 1, kind: input, shape index: {}]   ;;  %s791_s2 = inlined_call_operand.vmem [shape: f32[1,128], index: 2, kind: input, shape index: {}]   ;;  %s792_s3 = inlined_call_operand.hbm [shape: bf16[128,128], index: 3, kind: input, shape index: {}]   ;;  %s793_s4 = inlined_call_operand.vmem [shape: f32[1,128], index: 4, kind: input, shape index: {}]   ;;  %s794_s5 = inlined_call_operand.hbm [shape: bf16[128,128], index: 5, kind: input, shape index: {}]   ;;  %s795_s6 = inlined_call_operand.vmem [shape: f32[1,128], index: 6, kind: input, shape index: {}]   ;;  %s796_s7 = inlined_call_operand.hbm [shape: f32[16,128], index: 7, kind: output, shape index: {}]  }
   0x1   :  { %13 = vsyncpa [#allocation6], 0 }
   0x2   :  { %14 = vsyncpa [#allocation9], 0  ;;  %s33_s26 = sshll.u32 %s790_s1, 4  ;;  %s34_s26 = int_to_ptr.hbm [resolvable:$true] %s33_s26 }
   0x3   :  { %15 = vsyncpa [#allocation4], 0  ;;  %s700_s27 = smov [#allocation5]   ;;  %s20_s8 = sshll.u32 %s789_s0, 4  ;;  %s21_s8 = int_to_ptr.hbm [resolvable:$true] %s20_s8 }
   0x4   :  { %s35_s28 = sshll.u32 %s700_s27, 4  ;;  %s701_s9 = smov 64   ;;  %s36_s28 = int_to_ptr.vmem [resolvable:$true] %s35_s28 }
   0x5   :  { %s702_s10 = smov 4   ;;  %s703_s11 = smov [#allocation2]  }
   0x6   :  { %41 = dma.hbm_to_vmem [thread:$0]  %s34_s26, 1024, %s36_s28, [#allocation6], %s701_s9, %s701_s9, %s702_s10  }
   0x7   :  { %s22_s12 = sshll.u32 %s703_s11, 4  ;;  %s704_s13 = smov 128   ;;  %s23_s12 = int_to_ptr.vmem [resolvable:$true] %s22_s12 }
   0x8   :  { %s705_s14 = smov 8   ;;  %s48_s16 = sshll.u32 %s792_s3, 4  ;;  %s49_s16 = int_to_ptr.hbm [resolvable:$true] %s48_s16 }
   0x9   :  { %28 = dma.hbm_to_vmem [thread:$0]  %s21_s8, 256, %s23_s12, [#allocation3], %s704_s13, %s704_s13, %s705_s14  }
   0xa   :  { %s706_s17 = smov [#allocation7]   ;;  %s63_s20 = sshll.u32 %s794_s5, 4  ;;  %s64_s20 = int_to_ptr.hbm [resolvable:$true] %s63_s20 }
   0xb   :  { %s50_s0 = sshll.u32 %s706_s17, 4  ;;  %s707_s21 = smov [#allocation8]   ;;  %s51_s0 = int_to_ptr.vmem [resolvable:$true] %s50_s0 }
   0xc   :  { %56 = dma.hbm_to_vmem [thread:$0]  %s49_s16, 1024, %s51_s0, [#allocation6], %s701_s9, %s701_s9, %s702_s10  }
   0xd   :  { %s65_s22 = sshll.u32 %s707_s21, 4  ;;  %s66_s22 = int_to_ptr.vmem [resolvable:$true] %s65_s22 }
   0xe   :  { %71 = dma.hbm_to_vmem [thread:$0]  %s64_s20, 1024, %s66_s22, [#allocation9], %s701_s9, %s701_s9, %s702_s10  }
   0xf   :  { %692 = dma.done.wait [#allocation3], 256  }
  0x10   :  { %693 = vsyncadd [#allocation3], 4294967040 }
  0x11   :  { %694 = dma.done.wait [#allocation6], 2048  }
  0x12   :  { %695 = vsyncadd [#allocation6], 4294965248 }
  0x13   :  { %696 = dma.done.wait [#allocation9], 1024  }
  0x14   :  { %697 = vsyncadd [#allocation9], 4294966272  ;;  %v764_v0 = vld [vmem:[#allocation2] sm:$0xff]  ;;  %v768_v2 = vld [vmem:[#allocation2 + $0x8] sm:$0xff]  ;;  %s708_s26 = smov [#allocation10]  }
  0x15   :  { %v92_v1 = vmul.f32 %v764_v0, %v764_v0  ;;  %v93_v3 = vmul.f32 %v768_v2, %v768_v2  ;;  %v535_v4 = vld [vmem:[#allocation5 + $0x38] sm:$0xff]  ;;  %v534_v5 = vld [vmem:[#allocation5 + $0x30] sm:$0xff]  ;;  %v533_v6 = vld [vmem:[#allocation5 + $0x28] sm:$0xff]  ;;  %s415_s27 = sshll.u32 %s708_s26, 4  ;;  %s416_s27 = int_to_ptr.vmem [resolvable:$true] %s415_s27 }
  0x16   :  { %225 = vmatpush.bf16.msra.mxu0 %v535_v4  ;;  %v532_v8 = vld [vmem:[#allocation5 + $0x20] sm:$0xff]  ;;  %v531_v9 = vld [vmem:[#allocation5 + $0x18] sm:$0xff]  ;;  %v530_v10 = vld [vmem:[#allocation5 + $0x10] sm:$0xff] }
  0x17   :  { %94 = vadd.xlane.f32.xlu0 %v92_v1  ;;  %v529_v15 = vld [vmem:[#allocation5 + $0x8] sm:$0xff]  ;;  %v528_v18 = vld [vmem:[#allocation5] sm:$0xff]  ;;  %v543_v28 = vld [vmem:[#allocation7 + $0x38] sm:$0xff] }
  0x18   :  { %310 = vmatpush.bf16.msra.mxu1 %v543_v28  ;;  %v542_v31 = vld [vmem:[#allocation7 + $0x30] sm:$0xff]  ;;  %v541_v35 = vld [vmem:[#allocation7 + $0x28] sm:$0xff]  ;;  %v540_v41 = vld [vmem:[#allocation7 + $0x20] sm:$0xff] }
  0x19   :  { %v539_v63 = vld [vmem:[#allocation7 + $0x18] sm:$0xff]  ;;  %v538_v1 = vld [vmem:[#allocation7 + $0x10] sm:$0xff]  ;;  %v536_v4 = vld [vmem:[#allocation7] sm:$0xff] }
  0x1a   :  { %226 = vmatpush.bf16.msra.mxu0 %v534_v5  ;;  %v551_v5 = vld [vmem:[#allocation8 + $0x38] sm:$0xff] }
  0x1b   :  { %395 = vmatpush.bf16.msra.mxu2 %v551_v5 }
  0x1c   :  { %311 = vmatpush.bf16.msra.mxu1 %v542_v31 }
  0x1e   :  { %227 = vmatpush.bf16.msra.mxu0 %v533_v6  ;;  %v550_v6 = vld [vmem:[#allocation8 + $0x30] sm:$0xff] }
  0x1f   :  { %96 = vadd.xlane.f32.xlu0 %v93_v3  ;;  %v537_v3 = vld [vmem:[#allocation7 + $0x8] sm:$0xff]  ;;  %396 = vmatpush.bf16.msra.mxu2 %v550_v6 }
  0x20   :  { %312 = vmatpush.bf16.msra.mxu1 %v541_v35 }
  0x22   :  { %228 = vmatpush.bf16.msra.mxu0 %v532_v8  ;;  %v548_v8 = vld [vmem:[#allocation8 + $0x20] sm:$0xff] }
  0x24   :  { %313 = vmatpush.bf16.msra.mxu1 %v540_v41 }
  0x26   :  { %229 = vmatpush.bf16.msra.mxu0 %v531_v9 }
  0x28   :  { %314 = vmatpush.bf16.msra.mxu1 %v539_v63 }
  0x2a   :  { %230 = vmatpush.bf16.msra.mxu0 %v530_v10 }
  0x2c   :  { %315 = vmatpush.bf16.msra.mxu1 %v538_v1 }
  0x2e   :  { %231 = vmatpush.bf16.msra.mxu0 %v529_v15  ;;  %v547_v15 = vld [vmem:[#allocation8 + $0x18] sm:$0xff] }
  0x30   :  { %316 = vmatpush.bf16.msra.mxu1 %v537_v3 }
  0x32   :  { %232 = vmatpush.bf16.msra.mxu0 %v528_v18  ;;  %v544_v18 = vld [vmem:[#allocation8] sm:$0xff] }
  0x34   :  { %317 = vmatpush.bf16.msra.mxu1 %v536_v4 }
  0x8a   :  { %v95_v7 = vpop.xlane.xlu0 %94 }
  0x8b   :  { %564 = vrsqrt.f32 %v95_v7  ;;  %vm105_vm0 = vcmp.eq.f32.partialorder %v95_v7, inf  ;;  %v108_v24 = vand.u32 2147483648, %v95_v7  ;;  %vm107_vm1 = vcmp.eq.f32.partialorder %v95_v7, 0.0 }
  0x91   :  { %v565_v11 = vpop.eup %564 }
  0x92   :  { %v99_v12 = vmul.f32 %v565_v11, %v95_v7  ;;  %v97_v13 = vpop.xlane.xlu0 %96 }
  0x93   :  { %566 = vrsqrt.f32 %v97_v13  ;;  %vm117_vm2 = vcmp.eq.f32.partialorder %v97_v13, inf  ;;  %v120_v34 = vand.u32 2147483648, %v97_v13  ;;  %vm119_vm3 = vcmp.eq.f32.partialorder %v97_v13, 0.0 }
  0x94   :  { %v100_v14 = vmul.f32 %v565_v11, %v99_v12 }
  0x96   :  { %v101_v16 = vmul.f32 0.5, %v100_v14 }
  0x98   :  { %v102_v17 = vsub.f32 1.5, %v101_v16  ;;  %v546_v16 = vld [vmem:[#allocation8 + $0x10] sm:$0xff] }
  0x99   :  { %v567_v19 = vpop.eup %566 }
  0x9a   :  { %v103_v20 = vmul.f32 %v565_v11, %v102_v17  ;;  %v111_v21 = vmul.f32 %v567_v19, %v97_v13  ;;  %v545_v17 = vld [vmem:[#allocation8 + $0x8] sm:$0xff] }
  0x9c   :  { %v104_v22 = vmul.f32 %v103_v20, %v95_v7  ;;  %v112_v23 = vmul.f32 %v567_v19, %v111_v21  ;;  %v562_v20 = vld [vmem:[%s793_s4] ss:$0 sm:$0xff]  ;;  %s417_s4 = sshll.u32 %s796_s7, 4  ;;  %s418_s4 = int_to_ptr.hbm [resolvable:$true] %s417_s4 }
  0x9e   :  { %v106_v25 = vsel %vm105_vm0, %v95_v7, %v104_v22  ;;  %v113_v26 = vmul.f32 0.5, %v112_v23  ;;  %v549_v7 = vld [vmem:[#allocation8 + $0x28] sm:$0xff] }
  0x9f   :  { %v109_v27 = vsel %vm107_vm1, %v108_v24, %v106_v25  ;;  %397 = vmatpush.bf16.msra.mxu2 %v549_v7 }
  0xa0   :  { %v122_v29 = vmax.f32 %v109_v27, 1e-12  ;;  %v114_v30 = vsub.f32 1.5, %v113_v26  ;;  %v563_v27 = vld [vmem:[%s795_s6] ss:$0 sm:$0xff] }
  0xa2   :  { %568 = vrcp.f32 %v122_v29  ;;  %v115_v32 = vmul.f32 %v567_v19, %v114_v30  ;;  %v135_v47 = vand.u32 2147483648, %v122_v29  ;;  %vm129_vm5 = vweird.f32 %v122_v29 }
  0xa3   :  { %v133_v48 = vand.u32 2147483647, %v122_v29  ;;  %398 = vmatpush.bf16.msra.mxu2 %v548_v8 }
  0xa4   :  { %v116_v33 = vmul.f32 %v115_v32, %v97_v13  ;;  %v136_v54 = vor.u32 1.1754944e-38, %v135_v47 }
  0xa5   :  { %vm134_vm8 = vcmp.eq.f32.partialorder %v133_v48, 8.507059e+37 }
  0xa6   :  { %v118_v36 = vsel %vm117_vm2, %v97_v13, %v116_v33 }
  0xa7   :  { %v121_v37 = vsel %vm119_vm3, %v120_v34, %v118_v36  ;;  %399 = vmatpush.bf16.msra.mxu2 %v547_v15 }
  0xa8   :  { %v569_v38 = vpop.eup %568  ;;  %v123_v39 = vmax.f32 %v121_v37, 1e-12 }
  0xa9   :  { %v125_v40 = vmul.f32 %v569_v38, %v122_v29  ;;  %vm130_vm4 = vweird.f32 %v569_v38 }
  0xaa   :  { %570 = vrcp.f32 %v123_v39  ;;  %vm131_vm6 = vmor %vm129_vm5, %vm130_vm4  ;;  %v150_v50 = vand.u32 2147483648, %v123_v39  ;;  %v148_v53 = vand.u32 2147483647, %v123_v39  ;;  %vm144_vm9 = vweird.f32 %v123_v39 }
  0xab   :  { %v126_v42 = vsub.f32 1.0, %v125_v40  ;;  %400 = vmatpush.bf16.msra.mxu2 %v546_v16 }
  0xac   :  { %v151_v57 = vor.u32 1.1754944e-38, %v150_v50  ;;  %vm149_vm11 = vcmp.eq.f32.partialorder %v148_v53, 8.507059e+37 }
  0xad   :  { %v127_v43 = vmul.f32 %v569_v38, %v126_v42 }
  0xaf   :  { %v128_v45 = vadd.f32 %v569_v38, %v127_v43  ;;  %401 = vmatpush.bf16.msra.mxu2 %v545_v17 }
  0xb0   :  { %v571_v44 = vpop.eup %570 }
  0xb1   :  { %v140_v46 = vmul.f32 %v571_v44, %v123_v39  ;;  %v132_v51 = vsel %vm131_vm6, %v569_v38, %v128_v45  ;;  %vm145_vm7 = vweird.f32 %v571_v44 }
  0xb2   :  { %v137_v56 = vsel %vm134_vm8, %v136_v54, %v132_v51  ;;  %vm146_vm10 = vmor %vm144_vm9, %vm145_vm7 }
  0xb3   :  { %v141_v49 = vsub.f32 1.0, %v140_v46  ;;  %v154_v60 = vmul.f32 %v137_v56, %v764_v0  ;;  %402 = vmatpush.bf16.msra.mxu2 %v544_v18 }
  0xb5   :  { %v142_v52 = vmul.f32 %v571_v44, %v141_v49 }
  0xb7   :  { %v143_v55 = vadd.f32 %v571_v44, %v142_v52 }
  0xb9   :  { %v147_v58 = vsel %vm146_vm10, %v571_v44, %v143_v55 }
  0xba   :  { %v152_v59 = vsel %vm149_vm11, %v151_v57, %v147_v58 }
  0xbb   :  { %v155_v61 = vmul.f32 %v152_v59, %v768_v2  ;;  %v561_v2 = vld [vmem:[%s791_s2] ss:$0 sm:$0xff] }
  0xbd   :  { %v156_v62 = vpack.c.bf16 %v155_v61, %v154_v60 }
  0xbf   :  { %233 = vmatmul.bf16.vlgmr.msra.gmra.mxu0 %v156_v62 }
 0x13c   :  { %v234_v0 = vpop.f32.mrf.mxu0 }
 0x13d   :  { %v235_v9 = vadd.f32 %v561_v2, %v234_v0 }
 0x13f   :  { %v239_v12 = vmax.f32 %v235_v9, 0.0 }
 0x144   :  { %v236_v10 = vpop.f32.mrf.mxu0 }
 0x145   :  { %v237_v11 = vadd.f32 %v561_v2, %v236_v10 }
 0x147   :  { %v240_v13 = vmax.f32 %v237_v11, 0.0 }
 0x149   :  { %v241_v14 = vpack.c.bf16 %v240_v13, %v239_v12 }
 0x14b   :  { %318 = vmatmul.bf16.vlgmr.msra.gmra.mxu1 %v241_v14 }
 0x1c8   :  { %v319_v19 = vpop.f32.mrf.mxu1 }
 0x1c9   :  { %v320_v21 = vadd.f32 %v562_v20, %v319_v19 }
 0x1cb   :  { %v324_v24 = vmax.f32 %v320_v21, 0.0 }
 0x1d0   :  { %v321_v22 = vpop.f32.mrf.mxu1 }
 0x1d1   :  { %v322_v23 = vadd.f32 %v562_v20, %v321_v22 }
 0x1d3   :  { %v325_v25 = vmax.f32 %v322_v23, 0.0 }
 0x1d5   :  { %v326_v26 = vpack.c.bf16 %v325_v25, %v324_v24 }
 0x1d7   :  { %403 = vmatmul.bf16.vlgmr.msra.gmra.mxu2 %v326_v26 }
 0x25a   :  { %v404_v28 = vpop.f32.mrf.mxu2 }
 0x25b   :  { %v405_v29 = vadd.f32 %v563_v27, %v404_v28 }
 0x25d   :  { %409 = vst [vmem:[#allocation10] sm:$0xff] %v405_v29 }
 0x262   :  { %v406_v30 = vpop.f32.mrf.mxu2 }
 0x263   :  { %v407_v31 = vadd.f32 %v563_v27, %v406_v30 }
 0x265   :  { %410 = vst [vmem:[#allocation10 + $0x8] sm:$0xff] %v407_v31 }
 0x266   :  { %423 = dma.vmem_to_hbm [thread:$0]  %s416_s27, 256, %s418_s4, [#allocation4], %s704_s13, %s704_s13, %s705_s14  }
 0x267   :  { %698 = dma.done.wait [#allocation4], 256  }
 0x268   :  { %699 = vsyncadd [#allocation4], 4294967040 }
 0x269   :  { %428 = vsyncpa [#allocation3], 1 }
 0x26a   :  { %429 = vsyncpa [#allocation6], 1 }
 0x26b   :  { %430 = vsyncpa [#allocation9], 1 }
 0x26c   :  { %431 = vsyncpa [#allocation4], 1 }

</bundles_post_ra>
